<compile_context>
chip_gen: v5e
topology: v5e:2x2
jax: 0.10.0
libtpu: 0.0.40
codegen_flags: <defaults>
</compile_context>

<pallas_src>
import functools

import jax
import jax.numpy as jnp
from jax import lax
from jax.experimental import pallas as pl
from jax.experimental.pallas import tpu as pltpu

LANE = 128
SUBLANE = 8


def _round_up(x, mult):
    return ((x + mult - 1) // mult) * mult


def _vmem_limit_bytes():
    """Pick a scoped-VMEM limit that is safe on v5e/v6e (128 MiB) and v7x (64 MiB)."""
    try:
        info = pltpu.get_tpu_info()
        cap = getattr(info, "vmem_capacity_bytes", None)
    except Exception:
        cap = None
    if not cap:
        cap = 64 * 1024 * 1024
    return int(min(cap // 2, 64 * 1024 * 1024))


def _pick_tiles(m, k_pad, cout_p, vmem_budget):
    """Choose the matmul M-tile (tm) and the elementwise M-tile (tm2, a multiple of tm)."""
    tm_cap = min(1024, _round_up(m, LANE))
    tm = LANE
    for cand in (1024, 512, 256, 128):
        if cand > tm_cap:
            continue
        est = (2 * cand * k_pad * 2        # double-buffered bf16 patches tile
               + 2 * k_pad * cout_p * 2    # (conservatively x2) bf16 weight tile
               + 2 * cand * cout_p * 2     # double-buffered bf16 y tile
               + 4 * SUBLANE * cout_p * 4)  # partial-stat tiles
        if est <= vmem_budget:
            tm = cand
            break
    m_pad = _round_up(m, tm)
    grid_m = m_pad // tm
    # kernel 2 is purely mem-bound: use a bigger tile that divides m_pad exactly.
    tm2 = tm
    for r in (8, 4, 2):
        cand = tm * r
        if grid_m % r != 0:
            continue
        est2 = 2 * cand * cout_p * 2 + 2 * cand * cout_p * 4
        if est2 <= vmem_budget:
            tm2 = cand
            break
    return tm, tm2, m_pad, grid_m


# ----------------------------------------------------------------------------
# im2col glue (plain JAX): (N, C, H, W) -> (N*Ho*Wo, C*kh*kw)
# feature ordering matches weight.reshape(Cout, Cin*kh*kw): k = ci*kh*kw + i*kw + j
# ----------------------------------------------------------------------------
def im2col(x, kh, kw, stride, padding):
    n, c, h, w = x.shape
    xp = jnp.pad(x, ((0, 0), (0, 0), (padding, padding), (padding, padding)))
    ho = (h + 2 * padding - kh) // stride + 1
    wo = (w + 2 * padding - kw) // stride + 1
    cols = []
    for i in range(kh):
        for j in range(kw):
            cols.append(xp[:, :, i:i + stride * ho:stride, j:j + stride * wo:stride])
    cols = jnp.stack(cols, axis=0)                    # (kh*kw, N, C, Ho, Wo)
    cols = cols.transpose(1, 2, 0, 3, 4)              # (N, C, kh*kw, Ho, Wo)
    cols = cols.reshape(n, c * kh * kw, ho, wo)
    cols = cols.transpose(0, 2, 3, 1).reshape(n * ho * wo, c * kh * kw)
    return cols, ho, wo


def _as_patch_matrix(x, kh, kw, stride, padding):
    n, c, h, w = x.shape
    if kh == 1 and kw == 1 and padding == 0:
        # 1x1 conv: no im2col needed, the NHWC activations *are* the (M, Cin) matrix.
        xs = x[:, :, ::stride, ::stride]
        ho, wo = xs.shape[2], xs.shape[3]
        return xs.transpose(0, 2, 3, 1).reshape(n * ho * wo, c), ho, wo
    return im2col(x, kh, kw, stride, padding)


# ----------------------------------------------------------------------------
# Kernel 1: conv-as-matmul (bf16 MXU, f32 acc) + bias, per-tile partial BN stats
# ----------------------------------------------------------------------------
def conv_mm_stats_kernel(p_ref, w_ref, b_ref, y_ref, s_ref, q_ref, *, tm, m_valid):
    i = pl.program_id(0)
    acc = jnp.dot(p_ref[...], w_ref[...], preferred_element_type=jnp.float32)
    acc = acc + b_ref[...]
    y_ref[...] = acc.astype(y_ref.dtype)
    if m_valid is not None:
        # exclude padded rows (they would otherwise contribute `bias` to the stats)
        rows = i * tm + lax.broadcasted_iota(jnp.int32, acc.shape, 0)
        acc = jnp.where(rows < m_valid, acc, 0.0)
    ssum = jnp.sum(acc, axis=0, keepdims=True)          # (1, Cp)
    ssq = jnp.sum(acc * acc, axis=0, keepdims=True)     # (1, Cp)
    # one (8, Cp) aligned block per grid step -> no revisited accumulator, grid stays parallel
    s_ref[...] = jnp.broadcast_to(ssum, s_ref.shape)
    q_ref[...] = jnp.broadcast_to(ssq, q_ref.shape)


# ----------------------------------------------------------------------------
# Kernel 2: fused BatchNorm (precomputed scale/shift) + ReLU, elementwise
# ----------------------------------------------------------------------------
def bn_relu_kernel(y_ref, scale_ref, shift_ref, o_ref):
    y = y_ref[...].astype(jnp.float32)
    o_ref[...] = jnp.maximum(y * scale_ref[...] + shift_ref[...], 0.0)


# ----------------------------------------------------------------------------
# Wrapper: full Conv (Conv2d + BatchNorm2d(train) + ReLU) forward in NCHW
# ----------------------------------------------------------------------------
def conv_bn_relu(x, weight, bias, gamma, beta, *, stride, padding, eps=1e-5):
    n, cin, h, w = x.shape
    cout, _, kh, kw = weight.shape

    patches, ho, wo = _as_patch_matrix(x, kh, kw, stride, padding)   # (M, K)
    m, k = patches.shape

    k_pad = _round_up(k, LANE)
    cout_p = _round_up(cout, LANE)

    vmem_limit = _vmem_limit_bytes()
    tm, tm2, m_pad, grid_m = _pick_tiles(m, k_pad, cout_p, vmem_limit // 2)
    grid_m2 = m_pad // tm2
    m_valid = None if m_pad == m else m

    # Lane-dense, K-padded, bf16 MXU operands (accumulation stays f32 in-kernel).
    patches_p = jnp.pad(patches, ((0, m_pad - m), (0, k_pad - k))).astype(jnp.bfloat16)
    w_mat = weight.reshape(cout, cin * kh * kw).T                     # (K, Cout)
    w_p = jnp.pad(w_mat, ((0, k_pad - k), (0, cout_p - cout))).astype(jnp.bfloat16)
    b_p = jnp.pad(bias.reshape(1, cout).astype(jnp.float32),
                  ((0, 0), (0, cout_p - cout)))

    cost1 = pl.CostEstimate(
        flops=2 * m_pad * k_pad * cout_p,
        transcendentals=0,
        bytes_accessed=(m_pad * k_pad * 2 + k_pad * cout_p * 2 + cout_p * 4
                        + m_pad * cout_p * 2 + 2 * grid_m * SUBLANE * cout_p * 4),
    )

    y, s_out, q_out = pl.pallas_call(
        functools.partial(conv_mm_stats_kernel, tm=tm, m_valid=m_valid),
        out_shape=(
            jax.ShapeDtypeStruct((m_pad, cout_p), jnp.bfloat16),
            jax.ShapeDtypeStruct((grid_m * SUBLANE, cout_p), jnp.float32),
            jax.ShapeDtypeStruct((grid_m * SUBLANE, cout_p), jnp.float32),
        ),
        grid_spec=pltpu.PrefetchScalarGridSpec(
            num_scalar_prefetch=0,
            grid=(grid_m,),
            in_specs=[
                pl.BlockSpec((tm, k_pad), lambda i: (i, 0)),
                pl.BlockSpec((k_pad, cout_p), lambda i: (0, 0)),
                pl.BlockSpec((1, cout_p), lambda i: (0, 0)),
            ],
            out_specs=[
                pl.BlockSpec((tm, cout_p), lambda i: (i, 0)),
                pl.BlockSpec((SUBLANE, cout_p), lambda i: (i, 0)),
                pl.BlockSpec((SUBLANE, cout_p), lambda i: (i, 0)),
            ],
        ),
        compiler_params=pltpu.CompilerParams(
            dimension_semantics=("parallel",),
            vmem_limit_bytes=vmem_limit,
        ),
        cost_estimate=cost1,
    )(patches_p, w_p, b_p)

    # --- batch statistics from per-tile partials (Chan's parallel combine, avoids
    #     the catastrophic cancellation of a single global E[y^2] - mean^2) ---
    s_tile = s_out[::SUBLANE, :]                                   # (grid_m, Cp)
    q_tile = q_out[::SUBLANE, :]
    counts = jnp.array([min(tm, m - t * tm) for t in range(grid_m)],
                       dtype=jnp.float32).reshape(grid_m, 1)
    mu_tile = s_tile / counts
    m2_tile = jnp.maximum(q_tile - counts * mu_tile * mu_tile, 0.0)
    mean = jnp.sum(s_tile, axis=0, keepdims=True) / jnp.float32(m)  # (1, Cp)
    var = (jnp.sum(m2_tile, axis=0, keepdims=True)
           + jnp.sum(counts * (mu_tile - mean) ** 2, axis=0, keepdims=True)) / jnp.float32(m)
    var = jnp.maximum(var, 0.0)                                     # biased var (train-mode BN)

    gamma_p = jnp.pad(gamma.reshape(1, cout).astype(jnp.float32), ((0, 0), (0, cout_p - cout)))
    beta_p = jnp.pad(beta.reshape(1, cout).astype(jnp.float32), ((0, 0), (0, cout_p - cout)))
    scale = gamma_p * lax.rsqrt(var + eps)                          # (1, Cp)
    shift = beta_p - mean * scale                                   # (1, Cp)

    cost2 = pl.CostEstimate(
        flops=3 * m_pad * cout_p,
        transcendentals=0,
        bytes_accessed=m_pad * cout_p * 2 + m_pad * cout_p * 4 + 2 * cout_p * 4,
    )

    out_flat = pl.pallas_call(
        bn_relu_kernel,
        out_shape=jax.ShapeDtypeStruct((m_pad, cout_p), jnp.float32),
        grid_spec=pltpu.PrefetchScalarGridSpec(
            num_scalar_prefetch=0,
            grid=(grid_m2,),
            in_specs=[
                pl.BlockSpec((tm2, cout_p), lambda i: (i, 0)),
                pl.BlockSpec((1, cout_p), lambda i: (0, 0)),
                pl.BlockSpec((1, cout_p), lambda i: (0, 0)),
            ],
            out_specs=pl.BlockSpec((tm2, cout_p), lambda i: (i, 0)),
        ),
        compiler_params=pltpu.CompilerParams(
            dimension_semantics=("parallel",),
            vmem_limit_bytes=vmem_limit,
        ),
        cost_estimate=cost2,
    )(y, scale, shift)

    out = out_flat[:m, :cout].reshape(n, ho, wo, cout).transpose(0, 3, 1, 2)   # NCHW
    return out


# ----------------------------------------------------------------------------
# Pure-JAX reference for validation
# ----------------------------------------------------------------------------
def conv_bn_relu_ref(x, weight, bias, gamma, beta, *, stride, padding, eps=1e-5):
    y = lax.conv_general_dilated(
        x, weight, window_strides=(stride, stride),
        padding=((padding, padding), (padding, padding)),
        dimension_numbers=("NCHW", "OIHW", "NCHW"),
    ) + bias[None, :, None, None]
    mean = y.mean(axis=(0, 2, 3), keepdims=True)
    var = y.var(axis=(0, 2, 3), keepdims=True)   # biased, as used in train-mode BN
    yn = (y - mean) * lax.rsqrt(var + eps)
    return jnp.maximum(gamma[None, :, None, None] * yn + beta[None, :, None, None], 0.0)


if __name__ == "__main__":
    key = jax.random.PRNGKey(0)
    k_x, k_w, k_b, k_g, k_bt, k_x2, k_w2 = jax.random.split(key, 7)

    # --- Test 1: 3x3 stride-1 pad-1 Conv block (Inception 3x3 branch), small shapes ---
    N, CIN, H, W = 2, 4, 16, 16
    COUT, KH, KW = 8, 3, 3
    x = jax.random.normal(k_x, (N, CIN, H, W), dtype=jnp.float32)
    weight = 0.1 * jax.random.normal(k_w, (COUT, CIN, KH, KW), dtype=jnp.float32)
    bias = 0.1 * jax.random.normal(k_b, (COUT,), dtype=jnp.float32)
    gamma = 1.0 + 0.1 * jax.random.normal(k_g, (COUT,), dtype=jnp.float32)
    beta = 0.1 * jax.random.normal(k_bt, (COUT,), dtype=jnp.float32)

    out = jax.block_until_ready(
        conv_bn_relu(x, weight, bias, gamma, beta, stride=1, padding=1))
    ref = conv_bn_relu_ref(x, weight, bias, gamma, beta, stride=1, padding=1)
    assert out.shape == (N, COUT, H, W)
    err = float(jnp.max(jnp.abs(out - ref)))
    assert jnp.allclose(out, ref, atol=3e-2, rtol=3e-2), err   # bf16 MXU / bf16 y tolerance

    # --- Test 2: 1x1 Conv block fast path (no im2col); M=450 exercises M-padding + masking ---
    N2, CIN2, H2, W2, COUT2 = 2, 6, 15, 15, 16
    x2 = jax.random.normal(k_x2, (N2, CIN2, H2, W2), dtype=jnp.float32)
    w2 = 0.1 * jax.random.normal(k_w2, (COUT2, CIN2, 1, 1), dtype=jnp.float32)
    b2 = jnp.zeros((COUT2,), jnp.float32)
    g2 = jnp.ones((COUT2,), jnp.float32)
    bt2 = jnp.zeros((COUT2,), jnp.float32)

    out2 = jax.block_until_ready(
        conv_bn_relu(x2, w2, b2, g2, bt2, stride=1, padding=0))
    ref2 = conv_bn_relu_ref(x2, w2, b2, g2, bt2, stride=1, padding=0)
    assert out2.shape == (N2, COUT2, H2, W2)
    err2 = float(jnp.max(jnp.abs(out2 - ref2)))
    assert jnp.allclose(out2, ref2, atol=3e-2, rtol=3e-2), err2

    print("KERNEL_OK")
</pallas_src>

<mosaic_0001>
module attributes {stable_mosaic.version = 11 : i64} {
  func.func @conv_mm_stats_kernel(%arg0: i32, %arg1: memref<512x128xbf16, #tpu.memory_space<vmem>>, %arg2: memref<128x128xbf16, #tpu.memory_space<vmem>>, %arg3: memref<1x128xf32, #tpu.memory_space<vmem>>, %arg4: memref<512x128xbf16, #tpu.memory_space<vmem>>, %arg5: memref<8x128xf32, #tpu.memory_space<vmem>>, %arg6: memref<8x128xf32, #tpu.memory_space<vmem>>) attributes {dimension_semantics = [#tpu.dimension_semantics<parallel>], iteration_bounds = array<i64: 1>, scalar_prefetch = 0 : i64, scratch_operands = 0 : i64, tpu.core_type = #tpu.core_type<tc>, window_params = [{transform_indices = @transform_0, window_bounds = array<i64: 512, 128>}, {pipeline_mode = #tpu.pipeline_mode<synchronous>, transform_indices = @transform_1, window_bounds = array<i64: 128, 128>}, {pipeline_mode = #tpu.pipeline_mode<synchronous>, transform_indices = @transform_2, window_bounds = array<i64: 1, 128>}, {transform_indices = @transform_3, window_bounds = array<i64: 512, 128>}, {transform_indices = @transform_4, window_bounds = array<i64: 8, 128>}, {transform_indices = @transform_5, window_bounds = array<i64: 8, 128>}]} {
    %c0 = arith.constant 0 : index
    %c0_0 = arith.constant 0 : index
    %0 = vector.load %arg1[%c0, %c0_0] : memref<512x128xbf16, #tpu.memory_space<vmem>>, vector<512x128xbf16>
    %c0_1 = arith.constant 0 : index
    %c0_2 = arith.constant 0 : index
    %1 = vector.load %arg2[%c0_1, %c0_2] : memref<128x128xbf16, #tpu.memory_space<vmem>>, vector<128x128xbf16>
    %cst = arith.constant dense<0.000000e+00> : vector<512x128xf32>
    %2 = tpu.matmul %0, %1, %cst {dimension_numbers = #tpu.dot_dimension_numbers<[1], [0], [0], [1], [0, 0, 1, 1], [], []>} : vector<512x128xbf16>, vector<128x128xbf16>, vector<512x128xf32> -> vector<512x128xf32>
    %c0_3 = arith.constant 0 : index
    %c0_4 = arith.constant 0 : index
    %3 = vector.load %arg3[%c0_3, %c0_4] : memref<1x128xf32, #tpu.memory_space<vmem>>, vector<1x128xf32>
    %4 = vector.broadcast %3 : vector<1x128xf32> to vector<512x128xf32>
    %5 = arith.addf %2, %4 : vector<512x128xf32>
    %6 = arith.truncf %5 : vector<512x128xf32> to vector<512x128xbf16>
    %c0_5 = arith.constant 0 : index
    %c0_6 = arith.constant 0 : index
    %7 = vector.load %arg4[%c0_5, %c0_6] : memref<512x128xbf16, #tpu.memory_space<vmem>>, vector<512x128xbf16>
    tpu.vector_store %arg4[%c0_5, %c0_6], %6 {strides = array<i32>} : memref<512x128xbf16, #tpu.memory_space<vmem>>, vector<512x128xbf16>,
    %cst_7 = arith.constant dense<0.000000e+00> : vector<128xf32>
    %8 = vector.multi_reduction <add>, %5, %cst_7 [0] : vector<512x128xf32> to vector<128xf32>
    %9 = vector.shape_cast %8 : vector<128xf32> to vector<1x128xf32>
    %10 = arith.mulf %5, %5 : vector<512x128xf32>
    %cst_8 = arith.constant dense<0.000000e+00> : vector<128xf32>
    %11 = vector.multi_reduction <add>, %10, %cst_8 [0] : vector<512x128xf32> to vector<128xf32>
    %12 = vector.shape_cast %11 : vector<128xf32> to vector<1x128xf32>
    %13 = vector.shape_cast %9 : vector<1x128xf32> to vector<1x128xf32>
    %14 = vector.broadcast %13 : vector<1x128xf32> to vector<8x128xf32>
    %c0_9 = arith.constant 0 : index
    %c0_10 = arith.constant 0 : index
    %15 = vector.load %arg5[%c0_9, %c0_10] : memref<8x128xf32, #tpu.memory_space<vmem>>, vector<8x128xf32>
    tpu.vector_store %arg5[%c0_9, %c0_10], %14 {strides = array<i32>} : memref<8x128xf32, #tpu.memory_space<vmem>>, vector<8x128xf32>,
    %16 = vector.shape_cast %12 : vector<1x128xf32> to vector<1x128xf32>
    %17 = vector.broadcast %16 : vector<1x128xf32> to vector<8x128xf32>
    %c0_11 = arith.constant 0 : index
    %c0_12 = arith.constant 0 : index
    %18 = vector.load %arg6[%c0_11, %c0_12] : memref<8x128xf32, #tpu.memory_space<vmem>>, vector<8x128xf32>
    tpu.vector_store %arg6[%c0_11, %c0_12], %17 {strides = array<i32>} : memref<8x128xf32, #tpu.memory_space<vmem>>, vector<8x128xf32>,
    return
  }
  func.func @transform_0(%arg0: i32) -> (i32, i32) {
    %c0_i32 = arith.constant 0 : i32
    %c0_i32_0 = arith.constant 0 : i32
    return %arg0, %c0_i32 : i32, i32
  }
  func.func @transform_1(%arg0: i32) -> (i32, i32) {
    %c0_i32 = arith.constant 0 : i32
    %c0_i32_0 = arith.constant 0 : i32
    %c0_i32_1 = arith.constant 0 : i32
    return %c0_i32, %c0_i32_0 : i32, i32
  }
  func.func @transform_2(%arg0: i32) -> (i32, i32) {
    %c0_i32 = arith.constant 0 : i32
    %c0_i32_0 = arith.constant 0 : i32
    %c0_i32_1 = arith.constant 0 : i32
    return %c0_i32, %c0_i32_0 : i32, i32
  }
  func.func @transform_3(%arg0: i32) -> (i32, i32) {
    %c0_i32 = arith.constant 0 : i32
    %c0_i32_0 = arith.constant 0 : i32
    return %arg0, %c0_i32 : i32, i32
  }
  func.func @transform_4(%arg0: i32) -> (i32, i32) {
    %c0_i32 = arith.constant 0 : i32
    %c0_i32_0 = arith.constant 0 : i32
    return %arg0, %c0_i32 : i32, i32
  }
  func.func @transform_5(%arg0: i32) -> (i32, i32) {
    %c0_i32 = arith.constant 0 : i32
    %c0_i32_0 = arith.constant 0 : i32
    return %arg0, %c0_i32 : i32, i32
  }
}

</mosaic_0001>

<bundles_post_ra>
// kernel: tpu_custom_call.1
= control target key start
LH: loop header
LB: loop body
LE: loop exit
PB: predicated region body
PF: predicated region fallthrough
CT: control target
= control target key end

     0   :  { %11 = vsyncpa [#allocation3], 0  ;;  %s1944_s0 = inlined_call_operand.hbm [shape: bf16[512,128], index: 0, kind: input, shape index: {}]   ;;  %s1945_s1 = inlined_call_operand.hbm [shape: bf16[128,128], index: 1, kind: input, shape index: {}]   ;;  %s1946_s2 = inlined_call_operand.vmem [shape: f32[1,128], index: 2, kind: input, shape index: {}]   ;;  %s1947_s3 = inlined_call_operand.hbm [shape: bf16[512,128], index: 3, kind: output, shape index: {0}]   ;;  %s1948_s4 = inlined_call_operand.hbm [shape: f32[8,128], index: 4, kind: output, shape index: {1}]   ;;  %s1949_s5 = inlined_call_operand.hbm [shape: f32[8,128], index: 5, kind: output, shape index: {2}]  }
   0x1   :  { %12 = vsyncpa [#allocation6], 0 }
   0x2   :  { %13 = vsyncpa [#allocation4], 0 }
   0x3   :  { %14 = vsyncpa [#allocation9], 0  ;;  %s19_s20 = sshll.u32 %s1944_s0, 4  ;;  %s1478_s21 = smov [#allocation2]   ;;  %s20_s20 = int_to_ptr.hbm [resolvable:$true] %s19_s20 }
   0x4   :  { %s21_s22 = sshll.u32 %s1478_s21, 4  ;;  %s32_s25 = sshll.u32 %s1945_s1, 4  ;;  %s22_s22 = int_to_ptr.vmem [resolvable:$true] %s21_s22  ;;  %s33_s25 = int_to_ptr.hbm [resolvable:$true] %s32_s25 }
   0x5   :  { %s1479_s26 = smov 64   ;;  %s1480_s27 = smov 4  }
   0x6   :  { %27 = dma.hbm_to_vmem [thread:$0]  %s20_s20, 4096, %s22_s22, [#allocation3], %s1479_s26, %s1479_s26, %s1480_s27  }
   0x7   :  { %s1481_s28 = smov [#allocation5]  }
   0x8   :  { %s34_s29 = sshll.u32 %s1481_s28, 4  ;;  %s35_s29 = int_to_ptr.vmem [resolvable:$true] %s34_s29 }
   0x9   :  { %40 = dma.hbm_to_vmem [thread:$0]  %s33_s25, 1024, %s35_s29, [#allocation6], %s1479_s26, %s1479_s26, %s1480_s27  }
   0xa   :  { %1470 = dma.done.wait [#allocation3], 4096  }
   0xb   :  { %1471 = vsyncadd [#allocation3], 4294963200 }
   0xc   :  { %1472 = dma.done.wait [#allocation6], 1024  }
   0xd   :  { %1473 = vsyncadd [#allocation6], 4294966272  ;;  %v1126_v0 = vld [vmem:[#allocation5 + $0x38] sm:$0xff]  ;;  %v1125_v1 = vld [vmem:[#allocation5 + $0x30] sm:$0xff]  ;;  %s882_s8 = sshll.u32 %s1947_s3, 4  ;;  %s1483_s3 = smov [#allocation8]   ;;  %s883_s8 = int_to_ptr.hbm [resolvable:$true] %s882_s8 }
   0xe   :  { %375 = vmatpush.bf16.msra.mxu0 %v1126_v0  ;;  %1318 = vmatpush.bf16.msra.mxu1 %v1126_v0  ;;  %v1124_v2 = vld [vmem:[#allocation5 + $0x28] sm:$0xff]  ;;  %v1123_v3 = vld [vmem:[#allocation5 + $0x20] sm:$0xff]  ;;  %v1122_v4 = vld [vmem:[#allocation5 + $0x18] sm:$0xff]  ;;  %s894_s9 = sshll.u32 %s1483_s3, 4  ;;  %s896_s12 = sshll.u32 %s1948_s4, 4  ;;  %s895_s9 = int_to_ptr.vmem [resolvable:$true] %s894_s9  ;;  %s897_s12 = int_to_ptr.hbm [resolvable:$true] %s896_s12 }
   0xf   :  { %1319 = vmatpush.bf16.msra.mxu2 %v1126_v0  ;;  %1320 = vmatpush.bf16.msra.mxu3 %v1126_v0  ;;  %v1121_v5 = vld [vmem:[#allocation5 + $0x10] sm:$0xff]  ;;  %v1120_v6 = vld [vmem:[#allocation5 + $0x8] sm:$0xff]  ;;  %v1119_v7 = vld [vmem:[#allocation5] sm:$0xff]  ;;  %s1484_s13 = smov [#allocation10]   ;;  %s907_s17 = sshll.u32 %s1949_s5, 4  ;;  %s908_s17 = int_to_ptr.hbm [resolvable:$true] %s907_s17 }
  0x10   :  { %v1087_v8 = vld [vmem:[#allocation2] sm:$0xff]  ;;  %v1088_v10 = vld [vmem:[#allocation2 + $0x8] sm:$0xff]  ;;  %v1089_v13 = vld [vmem:[#allocation2 + $0x10] sm:$0xff]  ;;  %s905_s14 = sshll.u32 %s1484_s13, 4  ;;  %s906_s14 = int_to_ptr.vmem [resolvable:$true] %s905_s14 }
  0x11   :  { %v1095_v9 = vld [vmem:[#allocation2 + $0x40] sm:$0xff]  ;;  %v1096_v11 = vld [vmem:[#allocation2 + $0x48] sm:$0xff]  ;;  %v1097_v14 = vld [vmem:[#allocation2 + $0x50] sm:$0xff] }
  0x12   :  { %376 = vmatpush.bf16.msra.mxu0 %v1125_v1  ;;  %1321 = vmatpush.bf16.msra.mxu1 %v1125_v1  ;;  %v1103_v12 = vld [vmem:[#allocation2 + $0x80] sm:$0xff]  ;;  %v1104_v15 = vld [vmem:[#allocation2 + $0x88] sm:$0xff]  ;;  %v1090_v16 = vld [vmem:[#allocation2 + $0x18] sm:$0xff] }
  0x13   :  { %1322 = vmatpush.bf16.msra.mxu2 %v1125_v1  ;;  %1323 = vmatpush.bf16.msra.mxu3 %v1125_v1  ;;  %v1098_v17 = vld [vmem:[#allocation2 + $0x58] sm:$0xff]  ;;  %v1105_v18 = vld [vmem:[#allocation2 + $0x90] sm:$0xff]  ;;  %v1111_v19 = vld [vmem:[#allocation2 + $0xc0] sm:$0xff] }
  0x14   :  { %v1091_v20 = vld [vmem:[#allocation2 + $0x20] sm:$0xff]  ;;  %v1106_v22 = vld [vmem:[#allocation2 + $0x98] sm:$0xff]  ;;  %v1112_v23 = vld [vmem:[#allocation2 + $0xc8] sm:$0xff] }
  0x15   :  { %v1099_v21 = vld [vmem:[#allocation2 + $0x60] sm:$0xff]  ;;  %v1092_v24 = vld [vmem:[#allocation2 + $0x28] sm:$0xff]  ;;  %v1113_v27 = vld [vmem:[#allocation2 + $0xd0] sm:$0xff] }
  0x16   :  { %377 = vmatpush.bf16.msra.mxu0 %v1124_v2  ;;  %1324 = vmatpush.bf16.msra.mxu1 %v1124_v2  ;;  %v1100_v25 = vld [vmem:[#allocation2 + $0x68] sm:$0xff]  ;;  %v1107_v26 = vld [vmem:[#allocation2 + $0xa0] sm:$0xff]  ;;  %v1093_v28 = vld [vmem:[#allocation2 + $0x30] sm:$0xff] }
  0x17   :  { %1325 = vmatpush.bf16.msra.mxu2 %v1124_v2  ;;  %1326 = vmatpush.bf16.msra.mxu3 %v1124_v2  ;;  %v1101_v29 = vld [vmem:[#allocation2 + $0x70] sm:$0xff]  ;;  %v1108_v30 = vld [vmem:[#allocation2 + $0xa8] sm:$0xff]  ;;  %v1114_v31 = vld [vmem:[#allocation2 + $0xd8] sm:$0xff] }
  0x18   :  { %v1094_v32 = vld [vmem:[#allocation2 + $0x38] sm:$0xff]  ;;  %v1109_v34 = vld [vmem:[#allocation2 + $0xb0] sm:$0xff]  ;;  %v1115_v35 = vld [vmem:[#allocation2 + $0xe0] sm:$0xff] }
  0x19   :  { %v1102_v33 = vld [vmem:[#allocation2 + $0x78] sm:$0xff]  ;;  %v1530_v38 = vld [vmem:[%s1946_s2] ss:$0 sm:$0xff]  ;;  %v1116_v40 = vld [vmem:[#allocation2 + $0xe8] sm:$0xff]  ;;  %s1482_s2 = smov [#allocation7]  }
  0x1a   :  { %378 = vmatpush.bf16.msra.mxu0 %v1123_v3  ;;  %1327 = vmatpush.bf16.msra.mxu1 %v1123_v3  ;;  %v1110_v39 = vld [vmem:[#allocation2 + $0xb8] sm:$0xff]  ;;  %v1117_v58 = vld [vmem:[#allocation2 + $0xf0] sm:$0xff]  ;;  %s880_s30 = sshll.u32 %s1482_s2, 4  ;;  %s881_s30 = int_to_ptr.vmem [resolvable:$true] %s880_s30 }
  0x1b   :  { %1328 = vmatpush.bf16.msra.mxu2 %v1123_v3  ;;  %1329 = vmatpush.bf16.msra.mxu3 %v1123_v3 }
  0x1e   :  { %379 = vmatpush.bf16.msra.mxu0 %v1122_v4  ;;  %1330 = vmatpush.bf16.msra.mxu1 %v1122_v4 }
  0x1f   :  { %1331 = vmatpush.bf16.msra.mxu2 %v1122_v4  ;;  %1332 = vmatpush.bf16.msra.mxu3 %v1122_v4 }
  0x22   :  { %380 = vmatpush.bf16.msra.mxu0 %v1121_v5  ;;  %1333 = vmatpush.bf16.msra.mxu1 %v1121_v5 }
  0x23   :  { %1334 = vmatpush.bf16.msra.mxu2 %v1121_v5  ;;  %1335 = vmatpush.bf16.msra.mxu3 %v1121_v5 }
  0x26   :  { %381 = vmatpush.bf16.msra.mxu0 %v1120_v6  ;;  %1336 = vmatpush.bf16.msra.mxu1 %v1120_v6 }
  0x27   :  { %1337 = vmatpush.bf16.msra.mxu2 %v1120_v6  ;;  %1338 = vmatpush.bf16.msra.mxu3 %v1120_v6 }
  0x2a   :  { %382 = vmatpush.bf16.msra.mxu0 %v1119_v7  ;;  %1339 = vmatpush.bf16.msra.mxu1 %v1119_v7 }
  0x2b   :  { %1340 = vmatpush.bf16.msra.mxu2 %v1119_v7  ;;  %1341 = vmatpush.bf16.msra.mxu3 %v1119_v7 }
  0x2d   :  { %383 = vmatmul.bf16.vlgmr.msra.gmra.mxu0 %v1087_v8  ;;  %423 = vmatmul.bf16.vlgmr.msra.gmra.mxu1 %v1095_v9 }
  0x2e   :  { %463 = vmatmul.bf16.vlgmr.msra.gmra.mxu2 %v1103_v12  ;;  %503 = vmatmul.bf16.vlgmr.msra.gmra.mxu3 %v1111_v19  ;;  %v1118_v12 = vld [vmem:[#allocation2 + $0xf8] sm:$0xff] }
  0x3d   :  { %388 = vmatmul.bf16.gmra.mxu0 %v1088_v10  ;;  %428 = vmatmul.bf16.gmra.mxu1 %v1096_v11 }
  0x3e   :  { %468 = vmatmul.bf16.gmra.mxu2 %v1104_v15  ;;  %508 = vmatmul.bf16.gmra.mxu3 %v1112_v23 }
  0x4d   :  { %393 = vmatmul.bf16.gmra.mxu0 %v1089_v13  ;;  %433 = vmatmul.bf16.gmra.mxu1 %v1097_v14 }
  0x4e   :  { %473 = vmatmul.bf16.gmra.mxu2 %v1105_v18  ;;  %513 = vmatmul.bf16.gmra.mxu3 %v1113_v27 }
  0x5d   :  { %398 = vmatmul.bf16.gmra.mxu0 %v1090_v16  ;;  %438 = vmatmul.bf16.gmra.mxu1 %v1098_v17 }
  0x5e   :  { %478 = vmatmul.bf16.gmra.mxu2 %v1106_v22  ;;  %518 = vmatmul.bf16.gmra.mxu3 %v1114_v31 }
  0x6d   :  { %403 = vmatmul.bf16.gmra.mxu0 %v1091_v20  ;;  %443 = vmatmul.bf16.gmra.mxu1 %v1099_v21 }
  0x6e   :  { %483 = vmatmul.bf16.gmra.mxu2 %v1107_v26  ;;  %523 = vmatmul.bf16.gmra.mxu3 %v1115_v35 }
  0x7d   :  { %408 = vmatmul.bf16.gmra.mxu0 %v1092_v24  ;;  %448 = vmatmul.bf16.gmra.mxu1 %v1100_v25 }
  0x7e   :  { %488 = vmatmul.bf16.gmra.mxu2 %v1108_v30  ;;  %528 = vmatmul.bf16.gmra.mxu3 %v1116_v40 }
  0x8d   :  { %413 = vmatmul.bf16.gmra.mxu0 %v1093_v28  ;;  %453 = vmatmul.bf16.gmra.mxu1 %v1101_v29 }
  0x8e   :  { %493 = vmatmul.bf16.gmra.mxu2 %v1109_v34  ;;  %533 = vmatmul.bf16.gmra.mxu3 %v1117_v58 }
  0x9d   :  { %418 = vmatmul.bf16.gmra.mxu0 %v1094_v32  ;;  %458 = vmatmul.bf16.gmra.mxu1 %v1102_v33 }
  0x9e   :  { %498 = vmatmul.bf16.gmra.mxu2 %v1110_v39  ;;  %538 = vmatmul.bf16.gmra.mxu3 %v1118_v12 }
  0xaa   :  { %v384_v36 = vpop.f32.mrf.mxu0  ;;  %v424_v37 = vpop.f32.mrf.mxu1 }
  0xab   :  { %v385_v41 = vadd.f32 %v1530_v38, %v384_v36  ;;  %v1534_v42 = vadd.f32 %v1530_v38, %v424_v37 }
  0xad   :  { %v741_v47 = vmul.f32 %v385_v41, %v385_v41 }
  0xb1   :  { %v464_v1 = vpop.f32.mrf.mxu2  ;;  %v504_v36 = vpop.f32.mrf.mxu3 }
  0xb2   :  { %v386_v43 = vpop.f32.mrf.mxu0  ;;  %v426_v44 = vpop.f32.mrf.mxu1  ;;  %v1557_v9 = vadd.f32 %v1530_v38, %v464_v1 }
  0xb3   :  { %v387_v45 = vadd.f32 %v1530_v38, %v386_v43  ;;  %v1538_v46 = vadd.f32 %v1530_v38, %v426_v44  ;;  %v1608_v44 = vadd.f32 %v1530_v38, %v504_v36 }
  0xb5   :  { %v1130_v48 = vpack.c.bf16 %v387_v45, %v385_v41  ;;  %v672_v49 = vadd.f32 %v387_v45, %v385_v41  ;;  %v742_v50 = vmul.f32 %v387_v45, %v387_v45  ;;  %v1170_v51 = vpack.c.bf16 %v1538_v46, %v1534_v42 }
  0xb7   :  { %1131 = vst [vmem:[#allocation7] sm:$0xff] %v1130_v48   ;;  %v805_v52 = vadd.f32 %v742_v50, %v741_v47 }
  0xb8   :  { %1294 = vst [vmem:[#allocation7 + $0x40] sm:$0xff] %v1170_v51  }
  0xb9   :  { %v466_v10 = vpop.f32.mrf.mxu2  ;;  %v506_v47 = vpop.f32.mrf.mxu3 }
  0xba   :  { %v389_v53 = vpop.f32.mrf.mxu0  ;;  %v429_v54 = vpop.f32.mrf.mxu1  ;;  %v1560_v11 = vadd.f32 %v1530_v38, %v466_v10 }
  0xbb   :  { %v390_v55 = vadd.f32 %v1530_v38, %v389_v53  ;;  %v1544_v60 = vadd.f32 %v1530_v38, %v429_v54 }
  0xbc   :  { %v1210_v13 = vpack.c.bf16 %v1560_v11, %v1557_v9 }
  0xbd   :  { %v673_v56 = vadd.f32 %v672_v49, %v390_v55  ;;  %v743_v57 = vmul.f32 %v390_v55, %v390_v55  ;;  %v1614_v49 = vadd.f32 %v1530_v38, %v506_v47 }
  0xbe   :  { %1302 = vst [vmem:[#allocation7 + $0x80] sm:$0xff] %v1210_v13  }
  0xbf   :  { %v806_v59 = vadd.f32 %v805_v52, %v743_v57  ;;  %v1250_v51 = vpack.c.bf16 %v1614_v49, %v1608_v44 }
  0xc1   :  { %v469_v20 = vpop.f32.mrf.mxu2  ;;  %1310 = vst [vmem:[#allocation7 + $0xc0] sm:$0xff] %v1250_v51  }
  0xc2   :  { %v391_v61 = vpop.f32.mrf.mxu0  ;;  %v431_v62 = vpop.f32.mrf.mxu1  ;;  %v1581_v25 = vadd.f32 %v1530_v38, %v469_v20 }
  0xc3   :  { %v392_v63 = vadd.f32 %v1530_v38, %v391_v61  ;;  %v1548_v0 = vadd.f32 %v1530_v38, %v431_v62 }
  0xc5   :  { %v1135_v2 = vpack.c.bf16 %v392_v63, %v390_v55  ;;  %v1550_v3 = vadd.f32 %v673_v56, %v392_v63  ;;  %v744_v4 = vmul.f32 %v392_v63, %v392_v63  ;;  %v1175_v5 = vpack.c.bf16 %v1548_v0, %v1544_v60 }
  0xc7   :  { %1287 = vst [vmem:[#allocation7 + $0x8] sm:$0xff] %v1135_v2   ;;  %v1554_v6 = vadd.f32 %v806_v59, %v744_v4  ;;  %v509_v59 = vpop.f32.mrf.mxu3 }
  0xc8   :  { %1295 = vst [vmem:[#allocation7 + $0x48] sm:$0xff] %v1175_v5   ;;  %v1640_v4 = vadd.f32 %v1530_v38, %v509_v59 }
  0xc9   :  { %v471_v26 = vpop.f32.mrf.mxu2 }
  0xca   :  { %v394_v7 = vpop.f32.mrf.mxu0  ;;  %v434_v8 = vpop.f32.mrf.mxu1  ;;  %v1584_v27 = vadd.f32 %v1530_v38, %v471_v26 }
  0xcb   :  { %v1565_v14 = vadd.f32 %v1530_v38, %v434_v8  ;;  %v1568_v17 = vadd.f32 %v1530_v38, %v394_v7 }
  0xcc   :  { %v1215_v28 = vpack.c.bf16 %v1584_v27, %v1581_v25 }
  0xcd   :  { %v675_v51 = vadd.f32 %v1550_v3, %v1568_v17 }
  0xce   :  { %1303 = vst [vmem:[#allocation7 + $0x88] sm:$0xff] %v1215_v28  }
  0xcf   :  { %v511_v7 = vpop.f32.mrf.mxu3 }
  0xd0   :  { %v1646_v10 = vadd.f32 %v1530_v38, %v511_v7 }
  0xd1   :  { %v474_v35 = vpop.f32.mrf.mxu2 }
  0xd2   :  { %v396_v15 = vpop.f32.mrf.mxu0  ;;  %v436_v16 = vpop.f32.mrf.mxu1  ;;  %v1605_v43 = vadd.f32 %v1530_v38, %v474_v35  ;;  %v1255_v13 = vpack.c.bf16 %v1646_v10, %v1640_v4 }
  0xd3   :  { %v1571_v18 = vadd.f32 %v1530_v38, %v396_v15  ;;  %v1574_v19 = vadd.f32 %v1530_v38, %v436_v16 }
  0xd4   :  { %1311 = vst [vmem:[#allocation7 + $0xc8] sm:$0xff] %v1255_v13  }
  0xd5   :  { %v1140_v21 = vpack.c.bf16 %v1571_v18, %v1568_v17  ;;  %v1180_v22 = vpack.c.bf16 %v1574_v19, %v1565_v14 }
  0xd7   :  { %1288 = vst [vmem:[#allocation7 + $0x10] sm:$0xff] %v1140_v21   ;;  %v514_v26 = vpop.f32.mrf.mxu3 }
  0xd8   :  { %1296 = vst [vmem:[#allocation7 + $0x50] sm:$0xff] %v1180_v22  }
  0xd9   :  { %v476_v45 = vpop.f32.mrf.mxu2 }
  0xda   :  { %v399_v23 = vpop.f32.mrf.mxu0  ;;  %v439_v24 = vpop.f32.mrf.mxu1  ;;  %v1611_v48 = vadd.f32 %v1530_v38, %v476_v45  ;;  %v746_v45 = vmul.f32 %v1571_v18, %v1571_v18 }
  0xdb   :  { %v1589_v29 = vadd.f32 %v1530_v38, %v439_v24  ;;  %v1592_v32 = vadd.f32 %v1530_v38, %v399_v23 }
  0xdc   :  { %v1220_v50 = vpack.c.bf16 %v1611_v48, %v1605_v43 }
  0xde   :  { %1304 = vst [vmem:[#allocation7 + $0x90] sm:$0xff] %v1220_v50  }
  0xe1   :  { %v479_v58 = vpop.f32.mrf.mxu2 }
  0xe2   :  { %v401_v30 = vpop.f32.mrf.mxu0  ;;  %v441_v31 = vpop.f32.mrf.mxu1  ;;  %v1637_v2 = vadd.f32 %v1530_v38, %v479_v58 }
  0xe3   :  { %v1595_v33 = vadd.f32 %v1530_v38, %v401_v30  ;;  %v1598_v34 = vadd.f32 %v1530_v38, %v441_v31  ;;  %v745_v31 = vmul.f32 %v1568_v17, %v1568_v17 }
  0xe5   :  { %v1145_v37 = vpack.c.bf16 %v1595_v33, %v1592_v32  ;;  %v1185_v39 = vpack.c.bf16 %v1598_v34, %v1589_v29 }
  0xe7   :  { %1289 = vst [vmem:[#allocation7 + $0x18] sm:$0xff] %v1145_v37  }
  0xe8   :  { %1297 = vst [vmem:[#allocation7 + $0x58] sm:$0xff] %v1185_v39   ;;  %v1671_v39 = vadd.f32 %v1530_v38, %v514_v26 }
  0xe9   :  { %v481_v5 = vpop.f32.mrf.mxu2 }
  0xea   :  { %v404_v40 = vpop.f32.mrf.mxu0  ;;  %v444_v41 = vpop.f32.mrf.mxu1  ;;  %v1643_v8 = vadd.f32 %v1530_v38, %v481_v5 }
  0xeb   :  { %v1621_v52 = vadd.f32 %v1530_v38, %v444_v41  ;;  %v1624_v55 = vadd.f32 %v1530_v38, %v404_v40  ;;  %v516_v41 = vpop.f32.mrf.mxu3 }
  0xec   :  { %v1225_v12 = vpack.c.bf16 %v1643_v8, %v1637_v2  ;;  %v1679_v50 = vadd.f32 %v1530_v38, %v516_v41 }
  0xed   :  { %v749_v7 = vmul.f32 %v1624_v55, %v1624_v55 }
  0xee   :  { %1305 = vst [vmem:[#allocation7 + $0x98] sm:$0xff] %v1225_v12   ;;  %v1260_v59 = vpack.c.bf16 %v1679_v50, %v1671_v39 }
  0xf0   :  { %1312 = vst [vmem:[#allocation7 + $0xd0] sm:$0xff] %v1260_v59  }
  0xf1   :  { %v484_v24 = vpop.f32.mrf.mxu2 }
  0xf2   :  { %v406_v53 = vpop.f32.mrf.mxu0  ;;  %v446_v54 = vpop.f32.mrf.mxu1  ;;  %v1668_v37 = vadd.f32 %v1530_v38, %v484_v24 }
  0xf3   :  { %v1627_v56 = vadd.f32 %v1530_v38, %v406_v53  ;;  %v1630_v57 = vadd.f32 %v1530_v38, %v446_v54  ;;  %v808_v53 = vadd.f32 %v1554_v6, %v745_v31  ;;  %v747_v54 = vmul.f32 %v1592_v32, %v1592_v32 }
  0xf5   :  { %v1150_v61 = vpack.c.bf16 %v1627_v56, %v1624_v55  ;;  %v1190_v62 = vpack.c.bf16 %v1630_v57, %v1621_v52 }
  0xf7   :  { %1290 = vst [vmem:[#allocation7 + $0x20] sm:$0xff] %v1150_v61   ;;  %v676_v61 = vadd.f32 %v675_v51, %v1571_v18 }
  0xf8   :  { %1298 = vst [vmem:[#allocation7 + $0x60] sm:$0xff] %v1190_v62   ;;  %v809_v62 = vadd.f32 %v808_v53, %v746_v45 }
  0xf9   :  { %v486_v40 = vpop.f32.mrf.mxu2  ;;  %v677_v6 = vadd.f32 %v676_v61, %v1592_v32  ;;  %v750_v32 = vmul.f32 %v1627_v56, %v1627_v56 }
  0xfa   :  { %v409_v63 = vpop.f32.mrf.mxu0  ;;  %v449_v1 = vpop.f32.mrf.mxu1  ;;  %v1676_v47 = vadd.f32 %v1530_v38, %v486_v40  ;;  %v810_v17 = vadd.f32 %v809_v62, %v747_v54 }
  0xfb   :  { %v1653_v15 = vadd.f32 %v1530_v38, %v449_v1  ;;  %v410_v21 = vadd.f32 %v1530_v38, %v409_v63  ;;  %v748_v63 = vmul.f32 %v1595_v33, %v1595_v33  ;;  %v678_v24 = vadd.f32 %v677_v6, %v1595_v33 }
  0xfc   :  { %v1230_v58 = vpack.c.bf16 %v1676_v47, %v1668_v37 }
  0xfd   :  { %v811_v26 = vadd.f32 %v810_v17, %v748_v63  ;;  %v679_v31 = vadd.f32 %v678_v24, %v1624_v55 }
  0xfe   :  { %1306 = vst [vmem:[#allocation7 + $0xa0] sm:$0xff] %v1230_v58  }
  0xff   :  { %v680_v40 = vadd.f32 %v679_v31, %v1627_v56 }
 0x101   :  { %v681_v53 = vadd.f32 %v680_v40, %v410_v21 }
 0x102   :  { %v411_v16 = vpop.f32.mrf.mxu0  ;;  %v451_v20 = vpop.f32.mrf.mxu1 }
 0x103   :  { %v1657_v22 = vadd.f32 %v1530_v38, %v411_v16  ;;  %v1660_v23 = vadd.f32 %v1530_v38, %v451_v20  ;;  %v489_v16 = vpop.f32.mrf.mxu2  ;;  %v519_v20 = vpop.f32.mrf.mxu3 }
 0x104   :  { %v1714_v58 = vadd.f32 %v1530_v38, %v489_v16  ;;  %v1717_v59 = vadd.f32 %v1530_v38, %v519_v20 }
 0x105   :  { %v1155_v28 = vpack.c.bf16 %v1657_v22, %v410_v21  ;;  %v1195_v30 = vpack.c.bf16 %v1660_v23, %v1653_v15  ;;  %v752_v33 = vmul.f32 %v1657_v22, %v1657_v22 }
 0x107   :  { %1291 = vst [vmem:[#allocation7 + $0x28] sm:$0xff] %v1155_v28  }
 0x108   :  { %1299 = vst [vmem:[#allocation7 + $0x68] sm:$0xff] %v1195_v30  }
 0x10a   :  { %v414_v35 = vpop.f32.mrf.mxu0  ;;  %v454_v36 = vpop.f32.mrf.mxu1 }
 0x10b   :  { %v1694_v3 = vadd.f32 %v1530_v38, %v454_v36  ;;  %v415_v12 = vadd.f32 %v1530_v38, %v414_v35  ;;  %v812_v35 = vadd.f32 %v811_v26, %v749_v7  ;;  %v751_v36 = vmul.f32 %v410_v21, %v410_v21  ;;  %v491_v55 = vpop.f32.mrf.mxu2  ;;  %v521_v61 = vpop.f32.mrf.mxu3 }
 0x10c   :  { %v1721_v56 = vadd.f32 %v1530_v38, %v491_v55  ;;  %v1724_v6 = vadd.f32 %v1530_v38, %v521_v61  ;;  %v682_v21 = vadd.f32 %v681_v53, %v1657_v22  ;;  %v758_v61 = vmul.f32 %v1538_v46, %v1538_v46 }
 0x10d   :  { %v813_v41 = vadd.f32 %v812_v35, %v750_v32  ;;  %v753_v62 = vmul.f32 %v415_v12, %v415_v12 }
 0x10e   :  { %v1265_v7 = vpack.c.bf16 %v1724_v6, %v1717_v59  ;;  %v683_v16 = vadd.f32 %v682_v21, %v415_v12 }
 0x10f   :  { %v814_v54 = vadd.f32 %v813_v41, %v751_v36 }
 0x110   :  { %1313 = vst [vmem:[#allocation7 + $0xd8] sm:$0xff] %v1265_v7  }
 0x111   :  { %v815_v17 = vadd.f32 %v814_v54, %v752_v33 }
 0x112   :  { %v416_v1 = vpop.f32.mrf.mxu0  ;;  %v456_v5 = vpop.f32.mrf.mxu1 }
 0x113   :  { %v417_v18 = vadd.f32 %v1530_v38, %v416_v1  ;;  %v1702_v13 = vadd.f32 %v1530_v38, %v456_v5  ;;  %v1235_v5 = vpack.c.bf16 %v1721_v56, %v1714_v58  ;;  %v816_v20 = vadd.f32 %v815_v17, %v753_v62  ;;  %v494_v40 = vpop.f32.mrf.mxu2  ;;  %v524_v41 = vpop.f32.mrf.mxu3 }
 0x114   :  { %v1753_v7 = vadd.f32 %v1530_v38, %v524_v41 }
 0x115   :  { %v1160_v28 = vpack.c.bf16 %v417_v18, %v415_v12  ;;  %v1200_v30 = vpack.c.bf16 %v1702_v13, %v1694_v3  ;;  %v754_v1 = vmul.f32 %v417_v18, %v417_v18  ;;  %1307 = vst [vmem:[#allocation7 + $0xa8] sm:$0xff] %v1235_v5   ;;  %v684_v26 = vadd.f32 %v683_v16, %v417_v18 }
 0x116   :  { %v1750_v5 = vadd.f32 %v1530_v38, %v494_v40  ;;  %v762_v40 = vmul.f32 %v1574_v19, %v1574_v19 }
 0x117   :  { %1292 = vst [vmem:[#allocation7 + $0x30] sm:$0xff] %v1160_v28   ;;  %v817_v28 = vadd.f32 %v816_v20, %v754_v1 }
 0x118   :  { %1300 = vst [vmem:[#allocation7 + $0x70] sm:$0xff] %v1200_v30  }
 0x11a   :  { %v419_v45 = vpop.f32.mrf.mxu0  ;;  %v459_v51 = vpop.f32.mrf.mxu1 }
 0x11b   :  { %v420_v63 = vadd.f32 %v1530_v38, %v419_v45  ;;  %v1732_v32 = vadd.f32 %v1530_v38, %v459_v51  ;;  %v757_v51 = vmul.f32 %v1534_v42, %v1534_v42  ;;  %v526_v16 = vpop.f32.mrf.mxu3 }
 0x11d   :  { %v755_v24 = vmul.f32 %v420_v63, %v420_v63  ;;  %v685_v31 = vadd.f32 %v684_v26, %v420_v63 }
 0x11f   :  { %v818_v12 = vadd.f32 %v817_v28, %v755_v24  ;;  %v760_v24 = vmul.f32 %v1548_v0, %v1548_v0 }
 0x122   :  { %v421_v30 = vpop.f32.mrf.mxu0  ;;  %v461_v22 = vpop.f32.mrf.mxu1 }
 0x123   :  { %v422_v35 = vadd.f32 %v1530_v38, %v421_v30  ;;  %v1736_v36 = vadd.f32 %v1530_v38, %v461_v22  ;;  %v761_v22 = vmul.f32 %v1565_v14, %v1565_v14 }
 0x125   :  { %v1165_v33 = vpack.c.bf16 %v422_v35, %v420_v63  ;;  %v686_v45 = vadd.f32 %v685_v31, %v422_v35  ;;  %v756_v53 = vmul.f32 %v422_v35, %v422_v35  ;;  %v1205_v18 = vpack.c.bf16 %v1736_v36, %v1732_v32 }
 0x126   :  { %v759_v63 = vmul.f32 %v1544_v60, %v1544_v60 }
 0x127   :  { %1293 = vst [vmem:[#allocation7 + $0x38] sm:$0xff] %v1165_v33   ;;  %v687_v54 = vadd.f32 %v686_v45, %v1534_v42  ;;  %v819_v55 = vadd.f32 %v818_v12, %v756_v53  ;;  %v496_v42 = vpop.f32.mrf.mxu2  ;;  %v763_v12 = vmul.f32 %v1589_v29, %v1589_v29 }
 0x128   :  { %1301 = vst [vmem:[#allocation7 + $0x78] sm:$0xff] %v1205_v18   ;;  %v1756_v20 = vadd.f32 %v1530_v38, %v496_v42  ;;  %v529_v18 = vpop.f32.mrf.mxu3 }
 0x129   :  { %v688_v62 = vadd.f32 %v687_v54, %v1538_v46  ;;  %v820_v21 = vadd.f32 %v819_v55, %v757_v51  ;;  %v1759_v46 = vadd.f32 %v1530_v38, %v526_v16  ;;  %v765_v55 = vmul.f32 %v1621_v52, %v1621_v52 }
 0x12a   :  { %v1240_v28 = vpack.c.bf16 %v1756_v20, %v1750_v5  ;;  %v1793_v42 = vadd.f32 %v1530_v38, %v529_v18 }
 0x12b   :  { %v689_v17 = vadd.f32 %v688_v62, %v1544_v60  ;;  %v821_v1 = vadd.f32 %v820_v21, %v758_v61  ;;  %v1270_v30 = vpack.c.bf16 %v1759_v46, %v1753_v7  ;;  %v766_v62 = vmul.f32 %v1630_v57, %v1630_v57 }
 0x12c   :  { %1308 = vst [vmem:[#allocation7 + $0xb0] sm:$0xff] %v1240_v28  }
 0x12d   :  { %v690_v60 = vadd.f32 %v689_v17, %v1548_v0  ;;  %v822_v26 = vadd.f32 %v821_v1, %v759_v63  ;;  %1314 = vst [vmem:[#allocation7 + $0xe0] sm:$0xff] %v1270_v30   ;;  %v767_v63 = vmul.f32 %v1653_v15, %v1653_v15 }
 0x12f   :  { %v691_v31 = vadd.f32 %v690_v60, %v1565_v14  ;;  %v823_v35 = vadd.f32 %v822_v26, %v760_v24  ;;  %v499_v53 = vpop.f32.mrf.mxu2  ;;  %v764_v14 = vmul.f32 %v1598_v34, %v1598_v34  ;;  %v768_v60 = vmul.f32 %v1660_v23, %v1660_v23 }
 0x130   :  { %v531_v16 = vpop.f32.mrf.mxu3 }
 0x131   :  { %v692_v41 = vadd.f32 %v691_v31, %v1574_v19  ;;  %v824_v0 = vadd.f32 %v823_v35, %v761_v22  ;;  %v769_v31 = vmul.f32 %v1694_v3, %v1694_v3 }
 0x133   :  { %v825_v33 = vadd.f32 %v824_v0, %v762_v40  ;;  %v693_v45 = vadd.f32 %v692_v41, %v1589_v29 }
 0x135   :  { %v694_v51 = vadd.f32 %v693_v45, %v1598_v34  ;;  %v826_v54 = vadd.f32 %v825_v33, %v763_v12  ;;  %v1790_v34 = vadd.f32 %v1530_v38, %v499_v53  ;;  %v771_v33 = vmul.f32 %v1732_v32, %v1732_v32 }
 0x137   :  { %v695_v19 = vadd.f32 %v694_v51, %v1621_v52  ;;  %v827_v61 = vadd.f32 %v826_v54, %v764_v14  ;;  %v501_v52 = vpop.f32.mrf.mxu2  ;;  %v773_v14 = vmul.f32 %v1557_v9, %v1557_v9  ;;  %v774_v54 = vmul.f32 %v1560_v11, %v1560_v11 }
 0x138   :  { %v1796_v24 = vadd.f32 %v1530_v38, %v501_v52  ;;  %v534_v45 = vpop.f32.mrf.mxu3 }
 0x139   :  { %v696_v21 = vadd.f32 %v695_v19, %v1630_v57  ;;  %v828_v29 = vadd.f32 %v827_v61, %v765_v55  ;;  %v1799_v57 = vadd.f32 %v1530_v38, %v531_v16  ;;  %v778_v16 = vmul.f32 %v1611_v48, %v1611_v48 }
 0x13a   :  { %v1245_v28 = vpack.c.bf16 %v1796_v24, %v1790_v34 }
 0x13b   :  { %v697_v17 = vadd.f32 %v696_v21, %v1653_v15  ;;  %v829_v1 = vadd.f32 %v828_v29, %v766_v62  ;;  %v1275_v30 = vpack.c.bf16 %v1799_v57, %v1793_v42 }
 0x13c   :  { %1309 = vst [vmem:[#allocation7 + $0xb8] sm:$0xff] %v1245_v28  }
 0x13d   :  { %v698_v15 = vadd.f32 %v697_v17, %v1660_v23  ;;  %v830_v26 = vadd.f32 %v829_v1, %v767_v63  ;;  %v770_v23 = vmul.f32 %v1702_v13, %v1702_v13  ;;  %1315 = vst [vmem:[#allocation7 + $0xe8] sm:$0xff] %v1275_v30  }
 0x13f   :  { %v699_v22 = vadd.f32 %v698_v15, %v1694_v3  ;;  %v831_v35 = vadd.f32 %v830_v26, %v768_v60  ;;  %v772_v3 = vmul.f32 %v1736_v36, %v1736_v36 }
 0x140   :  { %v536_v21 = vpop.f32.mrf.mxu3 }
 0x141   :  { %v832_v40 = vadd.f32 %v831_v35, %v769_v31  ;;  %v700_v41 = vadd.f32 %v699_v22, %v1702_v13  ;;  %v1833_v29 = vadd.f32 %v1530_v38, %v536_v21  ;;  %v780_v22 = vmul.f32 %v1643_v8, %v1643_v8 }
 0x142   :  { %v781_v35 = vmul.f32 %v1668_v37, %v1668_v37 }
 0x143   :  { %v833_v0 = vadd.f32 %v832_v40, %v770_v23  ;;  %v701_v12 = vadd.f32 %v700_v41, %v1732_v32  ;;  %v775_v32 = vmul.f32 %v1581_v25, %v1581_v25 }
 0x145   :  { %v834_v53 = vadd.f32 %v833_v0, %v771_v33  ;;  %v702_v18 = vadd.f32 %v701_v12, %v1736_v36  ;;  %v1830_v36 = vadd.f32 %v1530_v38, %v534_v45  ;;  %v783_v0 = vmul.f32 %v1714_v58, %v1714_v58 }
 0x147   :  { %v703_v51 = vadd.f32 %v702_v18, %v1557_v9  ;;  %v835_v13 = vadd.f32 %v834_v53, %v772_v3  ;;  %v776_v9 = vmul.f32 %v1584_v27, %v1584_v27  ;;  %v1280_v17 = vpack.c.bf16 %v1833_v29, %v1830_v36 }
 0x148   :  { %v539_v30 = vpop.f32.mrf.mxu3  ;;  %v784_v53 = vmul.f32 %v1721_v56, %v1721_v56 }
 0x149   :  { %v704_v55 = vadd.f32 %v703_v51, %v1560_v11  ;;  %v836_v19 = vadd.f32 %v835_v13, %v773_v14  ;;  %1316 = vst [vmem:[#allocation7 + $0xf0] sm:$0xff] %v1280_v17   ;;  %v785_v51 = vmul.f32 %v1750_v5, %v1750_v5 }
 0x14b   :  { %v705_v61 = vadd.f32 %v704_v55, %v1581_v25  ;;  %v837_v62 = vadd.f32 %v836_v19, %v774_v54  ;;  %v777_v25 = vmul.f32 %v1605_v43, %v1605_v43  ;;  %v786_v54 = vmul.f32 %v1756_v20, %v1756_v20 }
 0x14c   :  { %v787_v19 = vmul.f32 %v1790_v34, %v1790_v34 }
 0x14d   :  { %v706_v63 = vadd.f32 %v705_v61, %v1584_v27  ;;  %v838_v11 = vadd.f32 %v837_v62, %v775_v32  ;;  %v779_v27 = vmul.f32 %v1637_v2, %v1637_v2  ;;  %v788_v61 = vmul.f32 %v1796_v24, %v1796_v24 }
 0x14e   :  { %v789_v62 = vmul.f32 %v1608_v44, %v1608_v44 }
 0x14f   :  { %v707_v1 = vadd.f32 %v706_v63, %v1605_v43  ;;  %v839_v52 = vadd.f32 %v838_v11, %v776_v9  ;;  %v790_v9 = vmul.f32 %v1614_v49, %v1614_v49 }
 0x150   :  { %v541_v45 = vpop.f32.mrf.mxu3 }
 0x151   :  { %v840_v60 = vadd.f32 %v839_v52, %v777_v25  ;;  %v708_v15 = vadd.f32 %v707_v1, %v1611_v48  ;;  %v782_v48 = vmul.f32 %v1676_v47, %v1676_v47 }
 0x153   :  { %v709_v26 = vadd.f32 %v708_v15, %v1637_v2  ;;  %v841_v28 = vadd.f32 %v840_v60, %v778_v16 }
 0x155   :  { %v710_v43 = vadd.f32 %v709_v26, %v1643_v8  ;;  %v842_v31 = vadd.f32 %v841_v28, %v779_v27  ;;  %v1862_v8 = vadd.f32 %v1530_v38, %v539_v30 }
 0x157   :  { %v711_v40 = vadd.f32 %v710_v43, %v1668_v37  ;;  %v843_v41 = vadd.f32 %v842_v31, %v780_v22  ;;  %v1868_v37 = vadd.f32 %v1530_v38, %v541_v45  ;;  %v802_v45 = vmul.f32 %v1833_v29, %v1833_v29 }
 0x159   :  { %v712_v23 = vadd.f32 %v711_v40, %v1676_v47  ;;  %v844_v2 = vadd.f32 %v843_v41, %v781_v35  ;;  %v1285_v18 = vpack.c.bf16 %v1868_v37, %v1862_v8 }
 0x15b   :  { %v713_v12 = vadd.f32 %v712_v23, %v1714_v58  ;;  %v845_v33 = vadd.f32 %v844_v2, %v782_v48  ;;  %1317 = vst [vmem:[#allocation7 + $0xf8] sm:$0xff] %v1285_v18   ;;  %v800_v23 = vmul.f32 %v1799_v57, %v1799_v57  ;;  %v804_v18 = vmul.f32 %v1868_v37, %v1868_v37 }
 0x15c   :  { %888 = dma.vmem_to_hbm [thread:$0]  %s881_s30, 4096, %s883_s8, [#allocation4], %s1479_s26, %s1479_s26, %s1480_s27  }
 0x15d   :  { %v714_v47 = vadd.f32 %v713_v12, %v1721_v56  ;;  %v846_v58 = vadd.f32 %v845_v33, %v783_v0  ;;  %v801_v12 = vmul.f32 %v1830_v36, %v1830_v36 }
 0x15f   :  { %v847_v3 = vadd.f32 %v846_v58, %v784_v53  ;;  %v715_v14 = vadd.f32 %v714_v47, %v1750_v5  ;;  %v803_v53 = vmul.f32 %v1862_v8, %v1862_v8 }
 0x161   :  { %v848_v38 = vadd.f32 %v847_v3, %v785_v51  ;;  %v716_v13 = vadd.f32 %v715_v14, %v1756_v20 }
 0x163   :  { %v849_v56 = vadd.f32 %v848_v38, %v786_v54  ;;  %v717_v55 = vadd.f32 %v716_v13, %v1790_v34  ;;  %v791_v34 = vmul.f32 %v1640_v4, %v1640_v4 }
 0x165   :  { %v850_v32 = vadd.f32 %v849_v56, %v787_v19  ;;  %v718_v5 = vadd.f32 %v717_v55, %v1796_v24  ;;  %v792_v24 = vmul.f32 %v1646_v10, %v1646_v10 }
 0x167   :  { %v719_v20 = vadd.f32 %v718_v5, %v1608_v44  ;;  %v851_v21 = vadd.f32 %v850_v32, %v788_v61  ;;  %v793_v44 = vmul.f32 %v1671_v39, %v1671_v39 }
 0x169   :  { %v720_v63 = vadd.f32 %v719_v20, %v1614_v49  ;;  %v852_v11 = vadd.f32 %v851_v21, %v789_v62  ;;  %v794_v49 = vmul.f32 %v1679_v50, %v1679_v50 }
 0x16b   :  { %v721_v17 = vadd.f32 %v720_v63, %v1640_v4  ;;  %v853_v25 = vadd.f32 %v852_v11, %v790_v9  ;;  %v795_v4 = vmul.f32 %v1717_v59, %v1717_v59 }
 0x16d   :  { %v722_v1 = vadd.f32 %v721_v17, %v1646_v10  ;;  %v854_v52 = vadd.f32 %v853_v25, %v791_v34  ;;  %v796_v10 = vmul.f32 %v1724_v6, %v1724_v6 }
 0x16f   :  { %v723_v16 = vadd.f32 %v722_v1, %v1671_v39  ;;  %v855_v60 = vadd.f32 %v854_v52, %v792_v24  ;;  %v797_v39 = vmul.f32 %v1753_v7, %v1753_v7 }
 0x171   :  { %v856_v15 = vadd.f32 %v855_v60, %v793_v44  ;;  %v724_v27 = vadd.f32 %v723_v16, %v1679_v50  ;;  %v798_v50 = vmul.f32 %v1759_v46, %v1759_v46 }
 0x173   :  { %v725_v26 = vadd.f32 %v724_v27, %v1717_v59  ;;  %v857_v28 = vadd.f32 %v856_v15, %v794_v49  ;;  %v799_v59 = vmul.f32 %v1793_v42, %v1793_v42 }
 0x175   :  { %v726_v30 = vadd.f32 %v725_v26, %v1724_v6  ;;  %v858_v22 = vadd.f32 %v857_v28, %v795_v4 }
 0x177   :  { %v727_v43 = vadd.f32 %v726_v30, %v1753_v7  ;;  %v859_v31 = vadd.f32 %v858_v22, %v796_v10 }
 0x179   :  { %v728_v35 = vadd.f32 %v727_v43, %v1759_v46  ;;  %v860_v40 = vadd.f32 %v859_v31, %v797_v39 }
 0x17b   :  { %v729_v41 = vadd.f32 %v728_v35, %v1793_v42  ;;  %v861_v48 = vadd.f32 %v860_v40, %v798_v50 }
 0x17d   :  { %v730_v6 = vadd.f32 %v729_v41, %v1799_v57  ;;  %v862_v2 = vadd.f32 %v861_v48, %v799_v59 }
 0x17f   :  { %v863_v7 = vadd.f32 %v862_v2, %v800_v23  ;;  %v731_v0 = vadd.f32 %v730_v6, %v1830_v36 }
 0x181   :  { %v864_v46 = vadd.f32 %v863_v7, %v801_v12  ;;  %v732_v33 = vadd.f32 %v731_v0, %v1833_v29 }
 0x183   :  { %v865_v42 = vadd.f32 %v864_v46, %v802_v45  ;;  %v733_v47 = vadd.f32 %v732_v33, %v1862_v8 }
 0x185   :  { %v866_v57 = vadd.f32 %v865_v42, %v803_v53  ;;  %v734_v58 = vadd.f32 %v733_v47, %v1868_v37 }
 0x187   :  { %v735_v3 = vrot.slane %v734_v58, 4  ;;  %v867_v36 = vadd.f32 %v866_v57, %v804_v18 }
 0x189   :  { %v736_v14 = vadd.f32 %v735_v3, %v734_v58  ;;  %v868_v51 = vrot.slane %v867_v36, 4 }
 0x18b   :  { %v737_v38 = vrot.slane %v736_v14, 2  ;;  %v869_v13 = vadd.f32 %v868_v51, %v867_v36 }
 0x18d   :  { %v870_v54 = vrot.slane %v869_v13, 2  ;;  %v738_v29 = vadd.f32 %v737_v38, %v736_v14 }
 0x18f   :  { %v739_v8 = vrot.slane %v738_v29, 1  ;;  %v871_v56 = vadd.f32 %v870_v54, %v869_v13 }
 0x191   :  { %v740_v37 = vadd.f32 %v739_v8, %v738_v29  ;;  %v872_v55 = vrot.slane %v871_v56, 1 }
 0x193   :  { %874 = vst [vmem:[#allocation8] sm:$0xff] %v740_v37  ;;  %v873_v19 = vadd.f32 %v872_v55, %v871_v56 }
 0x194   :  { %899 = dma.vmem_to_hbm [thread:$0]  %s895_s9, 128, %s897_s12, [#allocation9]  }
 0x195   :  { %875 = vst [vmem:[#allocation10] sm:$0xff] %v873_v19 }
 0x196   :  { %910 = dma.vmem_to_hbm [thread:$0]  %s906_s14, 128, %s908_s17, [#allocation9]  }
 0x197   :  { %1474 = dma.done.wait [#allocation4], 4096  }
 0x198   :  { %1475 = vsyncadd [#allocation4], 4294963200 }
 0x199   :  { %1476 = dma.done.wait [#allocation9], 256  }
 0x19a   :  { %1477 = vsyncadd [#allocation9], 4294967040 }
 0x19b   :  { %923 = vsyncpa [#allocation3], 1 }
 0x19c   :  { %924 = vsyncpa [#allocation6], 1 }
 0x19d   :  { %925 = vsyncpa [#allocation4], 1 }
 0x19e   :  { %926 = vsyncpa [#allocation9], 1 }

</bundles_post_ra>
